<compile_context>
chip_gen: v6e
topology: v6e:2x2x1
jax: 0.10.0
libtpu: 0.0.40
codegen_flags: <defaults>
</compile_context>

<pallas_src>
import jax
import jax.numpy as jnp
from jax.experimental import pallas as pl
from jax.experimental.pallas import tpu as pltpu

_MAX_BLOCK_BYTES = 2 << 20  # ~2 MiB per input block (f32) — safe on v5e/v6e/v7x


def _loss_kernel(xr_ref, x_ref, mu_ref, lv_ref, out_ref, acc_ref, kld_ref):
    c = pl.program_id(0)          # core-split axis ("parallel")
    i = pl.program_id(1)          # reduction axis ("arbitrary")

    @pl.when(i == 0)
    def _init():
        acc_ref[...] = jnp.zeros_like(acc_ref)
        # KLD once per core (tiny); only core 0 contributes it to its partial.
        mu = mu_ref[...].astype(jnp.float32)
        lv = lv_ref[...].astype(jnp.float32)
        kld = -0.5 * jnp.sum(1.0 + lv - mu * mu - jnp.exp(lv))
        kld_ref[0] = jnp.where(c == 0, kld, 0.0)

    # Steady state: VPU-only (sub, mul, add) — stays hidden under HBM DMA.
    diff = xr_ref[...].astype(jnp.float32) - x_ref[...].astype(jnp.float32)
    acc_ref[...] += diff * diff

    @pl.when(i == pl.num_programs(1) - 1)
    def _fin():
        partial = jnp.sum(acc_ref[...]) + 1.5 * kld_ref[0]
        out_ref[...] = jnp.broadcast_to(partial, out_ref.shape).astype(jnp.float32)


def _largest_divisor_tile(num_rows, max_rows):
    """Largest multiple of 8 that divides num_rows and is <= max_rows."""
    t = (min(max_rows, num_rows) // 8) * 8
    while t >= 8:
        if num_rows % t == 0:
            return t
        t -= 8
    return None


def custom_loss(x_recon, x, mu, logvar):
    """Pallas implementation of customLoss.forward. Returns a scalar float32."""
    assert x_recon.shape == x.shape
    assert mu.shape == logvar.shape

    xr_flat = x_recon.reshape(-1)
    x_flat = x.reshape(-1)
    total = x_flat.shape[0]

    # Widest lane-dense last dim that divides the element count (fewer, larger
    # contiguous DMA rows). No full-tensor padding copy in any case.
    lane = 128
    for cand in (512, 256, 128):
        if total % cand == 0:
            lane = cand
            break

    main = (total // lane) * lane
    rem = total - main  # < 128 elements; summed in the wrapper if nonzero

    if rem:
        xr_main, x_main = xr_flat[:main], x_flat[:main]
    else:
        xr_main, x_main = xr_flat, x_flat

    num_rows = main // lane
    xr2 = xr_main.reshape(num_rows, lane)
    x2 = x_main.reshape(num_rows, lane)

    # Row-tile size: whole thing if it fits the block budget, else the largest
    # 8-aligned divisor of num_rows. Rare fallback: zero-pad rows (zeros add 0
    # to the squared-difference sum).
    max_rows = max(8, _MAX_BLOCK_BYTES // (lane * 4))
    if num_rows <= max_rows:
        tile_r = num_rows
    else:
        tile_r = _largest_divisor_tile(num_rows, max_rows)
        if tile_r is None:
            tile_r = (max_rows // 8) * 8
            pad_rows = (-num_rows) % tile_r
            xr2 = jnp.pad(xr2, ((0, pad_rows), (0, 0)))
            x2 = jnp.pad(x2, ((0, pad_rows), (0, 0)))
            num_rows += pad_rows
    num_tiles = num_rows // tile_r

    # Split the row-tile range across both TensorCores (v7x); serial elsewhere.
    num_cores = 2 if (num_tiles >= 2 and num_tiles % 2 == 0) else 1
    tiles_per_core = num_tiles // num_cores

    img_map = lambda c, i: (c * tiles_per_core + i, 0)
    const_map = lambda c, i: (0, 0)

    out = pl.pallas_call(
        _loss_kernel,
        out_shape=jax.ShapeDtypeStruct((num_cores, 8, 128), jnp.float32),
        grid_spec=pltpu.PrefetchScalarGridSpec(
            num_scalar_prefetch=0,
            grid=(num_cores, tiles_per_core),
            in_specs=[
                pl.BlockSpec((tile_r, lane), img_map),
                pl.BlockSpec((tile_r, lane), img_map),
                pl.BlockSpec(mu.shape, const_map),      # resident, not re-DMA'd
                pl.BlockSpec(logvar.shape, const_map),  # resident, not re-DMA'd
            ],
            out_specs=pl.BlockSpec((1, 8, 128), lambda c, i: (c, 0, 0)),
            scratch_shapes=[
                pltpu.VMEM((tile_r, lane), jnp.float32),  # MSE accumulator
                pltpu.SMEM((1,), jnp.float32),            # per-core KLD scalar
            ],
        ),
        compiler_params=pltpu.CompilerParams(
            dimension_semantics=("parallel", "arbitrary"),
        ),
    )(xr2, x2, mu, logvar)

    loss = jnp.sum(out[:, 0, 0])
    if rem:
        tail = xr_flat[main:].astype(jnp.float32) - x_flat[main:].astype(jnp.float32)
        loss = loss + jnp.sum(tail * tail)
    return loss


if __name__ == "__main__":
    key = jax.random.PRNGKey(0)
    k1, k2, k3, k4 = jax.random.split(key, 4)

    # Small shapes consistent with a ConvNet VAE: images NCHW, latents (N, Z).
    N, C, H, W = 2, 4, 16, 16
    Z = 32
    x_recon = jax.random.normal(k1, (N, C, H, W), dtype=jnp.float32)
    x = jax.random.normal(k2, (N, C, H, W), dtype=jnp.float32)
    mu = jax.random.normal(k3, (N, Z), dtype=jnp.float32) * 0.5
    logvar = jax.random.normal(k4, (N, Z), dtype=jnp.float32) * 0.1

    loss = custom_loss(x_recon, x, mu, logvar)
    jax.block_until_ready(loss)

    # Reference check (plain JAX)
    ref_mse = jnp.sum((x_recon - x) ** 2)
    ref_kld = -0.5 * jnp.sum(1.0 + logvar - mu ** 2 - jnp.exp(logvar))
    ref = ref_mse + 1.5 * ref_kld
    assert jnp.allclose(loss, ref, rtol=1e-5, atol=1e-4), (loss, ref)

    print("KERNEL_OK")
</pallas_src>

<mosaic_0001>
module attributes {stable_mosaic.version = 11 : i64} {
  func.func @_loss_kernel(%arg0: i32, %arg1: i32, %arg2: memref<4x512xf32, #tpu.memory_space<vmem>>, %arg3: memref<4x512xf32, #tpu.memory_space<vmem>>, %arg4: memref<2x32xf32, #tpu.memory_space<vmem>>, %arg5: memref<2x32xf32, #tpu.memory_space<vmem>>, %arg6: memref<1x8x128xf32, #tpu.memory_space<vmem>>, %arg7: memref<4x512xf32, #tpu.memory_space<vmem>>, %arg8: memref<1xf32, #tpu.memory_space<smem>>) attributes {dimension_semantics = [#tpu.dimension_semantics<parallel>, #tpu.dimension_semantics<arbitrary>], iteration_bounds = array<i64: 1, 1>, scalar_prefetch = 0 : i64, scratch_operands = 2 : i64, tpu.core_type = #tpu.core_type<tc>, window_params = [{transform_indices = @transform_0, window_bounds = array<i64: 4, 512>}, {transform_indices = @transform_1, window_bounds = array<i64: 4, 512>}, {pipeline_mode = #tpu.pipeline_mode<synchronous>, transform_indices = @transform_2, window_bounds = array<i64: 2, 32>}, {pipeline_mode = #tpu.pipeline_mode<synchronous>, transform_indices = @transform_3, window_bounds = array<i64: 2, 32>}, {transform_indices = @transform_4, window_bounds = array<i64: 1, 8, 128>}]} {
    %c0_i32 = arith.constant 0 : i32
    %0 = arith.cmpi eq, %arg1, %c0_i32 : i32
    %1 = arith.extui %0 : i1 to i32
    %c0_i32_0 = arith.constant 0 : i32
    %2 = arith.cmpi ne, %1, %c0_i32_0 : i32
    scf.if %2 {
      %cst = arith.constant 0.000000e+00 : f32
      %13 = vector.broadcast %cst : f32 to vector<4x512xf32>
      %c0_10 = arith.constant 0 : index
      %c0_11 = arith.constant 0 : index
      %14 = vector.load %arg7[%c0_10, %c0_11] : memref<4x512xf32, #tpu.memory_space<vmem>>, vector<4x512xf32>
      tpu.vector_store %arg7[%c0_10, %c0_11], %13 {strides = array<i32>} : memref<4x512xf32, #tpu.memory_space<vmem>>, vector<4x512xf32>,
      %c0_12 = arith.constant 0 : index
      %c0_13 = arith.constant 0 : index
      %15 = vector.load %arg4[%c0_12, %c0_13] : memref<2x32xf32, #tpu.memory_space<vmem>>, vector<2x32xf32>
      %c0_14 = arith.constant 0 : index
      %c0_15 = arith.constant 0 : index
      %16 = vector.load %arg5[%c0_14, %c0_15] : memref<2x32xf32, #tpu.memory_space<vmem>>, vector<2x32xf32>
      %cst_16 = arith.constant 1.000000e+00 : f32
      %17 = vector.broadcast %cst_16 : f32 to vector<2x32xf32>
      %18 = arith.addf %17, %16 : vector<2x32xf32>
      %19 = arith.mulf %15, %15 : vector<2x32xf32>
      %20 = arith.subf %18, %19 : vector<2x32xf32>
      %21 = math.exp %16 : vector<2x32xf32>
      %22 = arith.subf %20, %21 : vector<2x32xf32>
      %23 = vector.shape_cast %22 : vector<2x32xf32> to vector<1x2x32xf32>
      %cst_17 = arith.constant dense<0.000000e+00> : vector<1xf32>
      %24 = vector.multi_reduction <add>, %23, %cst_17 [1, 2] : vector<1x2x32xf32> to vector<1xf32>
      %25 = vector.shape_cast %24 : vector<1xf32> to vector<1x1x1xf32>
      %26 = vector.extract %25[0, 0, 0] : f32 from vector<1x1x1xf32>
      %cst_18 = arith.constant -5.000000e-01 : f32
      %27 = arith.mulf %cst_18, %26 : f32
      %c0_i32_19 = arith.constant 0 : i32
      %28 = arith.cmpi eq, %arg0, %c0_i32_19 : i32
      %cst_20 = arith.constant 0.000000e+00 : f32
      %29 = arith.select %28, %27, %cst_20 : f32
      %c0_21 = arith.constant 0 : index
      %30 = memref.load %arg8[%c0_21] : memref<1xf32, #tpu.memory_space<smem>>
      memref.store %29, %arg8[%c0_21] : memref<1xf32, #tpu.memory_space<smem>>
    } else {
    }
    %c0 = arith.constant 0 : index
    %c0_1 = arith.constant 0 : index
    %3 = vector.load %arg2[%c0, %c0_1] : memref<4x512xf32, #tpu.memory_space<vmem>>, vector<4x512xf32>
    %c0_2 = arith.constant 0 : index
    %c0_3 = arith.constant 0 : index
    %4 = vector.load %arg3[%c0_2, %c0_3] : memref<4x512xf32, #tpu.memory_space<vmem>>, vector<4x512xf32>
    %5 = arith.subf %3, %4 : vector<4x512xf32>
    %c0_4 = arith.constant 0 : index
    %c0_5 = arith.constant 0 : index
    %6 = vector.load %arg7[%c0_4, %c0_5] : memref<4x512xf32, #tpu.memory_space<vmem>>, vector<4x512xf32>
    %7 = arith.mulf %5, %5 : vector<4x512xf32>
    %8 = arith.addf %6, %7 : vector<4x512xf32>
    %c0_6 = arith.constant 0 : index
    %c0_7 = arith.constant 0 : index
    %9 = vector.load %arg7[%c0_6, %c0_7] : memref<4x512xf32, #tpu.memory_space<vmem>>, vector<4x512xf32>
    tpu.vector_store %arg7[%c0_6, %c0_7], %8 {strides = array<i32>} : memref<4x512xf32, #tpu.memory_space<vmem>>, vector<4x512xf32>,
    %c0_i32_8 = arith.constant 0 : i32
    %10 = arith.cmpi eq, %arg1, %c0_i32_8 : i32
    %11 = arith.extui %10 : i1 to i32
    %c0_i32_9 = arith.constant 0 : i32
    %12 = arith.cmpi ne, %11, %c0_i32_9 : i32
    scf.if %12 {
      %c0_10 = arith.constant 0 : index
      %c0_11 = arith.constant 0 : index
      %13 = vector.load %arg7[%c0_10, %c0_11] : memref<4x512xf32, #tpu.memory_space<vmem>>, vector<4x512xf32>
      %14 = vector.shape_cast %13 : vector<4x512xf32> to vector<1x4x512xf32>
      %cst = arith.constant dense<0.000000e+00> : vector<1xf32>
      %15 = vector.multi_reduction <add>, %14, %cst [1, 2] : vector<1x4x512xf32> to vector<1xf32>
      %16 = vector.shape_cast %15 : vector<1xf32> to vector<1x1x1xf32>
      %17 = vector.extract %16[0, 0, 0] : f32 from vector<1x1x1xf32>
      %c0_12 = arith.constant 0 : index
      %18 = memref.load %arg8[%c0_12] : memref<1xf32, #tpu.memory_space<smem>>
      %cst_13 = arith.constant 1.500000e+00 : f32
      %19 = arith.mulf %cst_13, %18 : f32
      %20 = arith.addf %17, %19 : f32
      %21 = vector.broadcast %20 : f32 to vector<1x8x128xf32>
      %c0_14 = arith.constant 0 : index
      %c0_15 = arith.constant 0 : index
      %c0_16 = arith.constant 0 : index
      %22 = vector.load %arg6[%c0_14, %c0_15, %c0_16] : memref<1x8x128xf32, #tpu.memory_space<vmem>>, vector<1x8x128xf32>
      tpu.vector_store %arg6[%c0_14, %c0_15, %c0_16], %21 {strides = array<i32>} : memref<1x8x128xf32, #tpu.memory_space<vmem>>, vector<1x8x128xf32>,
    } else {
    }
    return
  }
  func.func @transform_0(%arg0: i32, %arg1: i32) -> (i32, i32) {
    %c1_i32 = arith.constant 1 : i32
    %0 = arith.muli %arg0, %c1_i32 : i32
    %1 = arith.addi %0, %arg1 : i32
    %c0_i32 = arith.constant 0 : i32
    %c0_i32_0 = arith.constant 0 : i32
    return %1, %c0_i32 : i32, i32
  }
  func.func @transform_1(%arg0: i32, %arg1: i32) -> (i32, i32) {
    %c1_i32 = arith.constant 1 : i32
    %0 = arith.muli %arg0, %c1_i32 : i32
    %1 = arith.addi %0, %arg1 : i32
    %c0_i32 = arith.constant 0 : i32
    %c0_i32_0 = arith.constant 0 : i32
    return %1, %c0_i32 : i32, i32
  }
  func.func @transform_2(%arg0: i32, %arg1: i32) -> (i32, i32) {
    %c0_i32 = arith.constant 0 : i32
    %c0_i32_0 = arith.constant 0 : i32
    %c0_i32_1 = arith.constant 0 : i32
    return %c0_i32, %c0_i32_0 : i32, i32
  }
  func.func @transform_3(%arg0: i32, %arg1: i32) -> (i32, i32) {
    %c0_i32 = arith.constant 0 : i32
    %c0_i32_0 = arith.constant 0 : i32
    %c0_i32_1 = arith.constant 0 : i32
    return %c0_i32, %c0_i32_0 : i32, i32
  }
  func.func @transform_4(%arg0: i32, %arg1: i32) -> (i32, i32, i32) {
    %c0_i32 = arith.constant 0 : i32
    %c0_i32_0 = arith.constant 0 : i32
    %c0_i32_1 = arith.constant 0 : i32
    return %arg0, %c0_i32, %c0_i32_0 : i32, i32, i32
  }
}

</mosaic_0001>

<bundles_post_ra>
// kernel: tpu_custom_call.1
= control target key start
LH: loop header
LB: loop body
LE: loop exit
PB: predicated region body
PF: predicated region fallthrough
CT: control target
= control target key end

     0   :  { %9 = vsyncpa [#allocation5], 0  ;;  %s263_s0 = inlined_call_operand.hbm [shape: f32[4,512], index: 0, kind: input, shape index: {}]   ;;  %s264_s1 = inlined_call_operand.hbm [shape: f32[4,512], index: 1, kind: input, shape index: {}]   ;;  %s265_s2 = inlined_call_operand.vmem [shape: f32[2,32], index: 2, kind: input, shape index: {}]   ;;  %s266_s3 = inlined_call_operand.vmem [shape: f32[2,32], index: 3, kind: input, shape index: {}]   ;;  %s267_s4 = inlined_call_operand.hbm [shape: f32[1,8,128], index: 4, kind: output, shape index: {}]  }
   0x1   :  { %10 = vsyncpa [#allocation8], 0 }
   0x2   :  { %11 = vsyncpa [#allocation6], 0  ;;  %s220_s15 = smov [#allocation4]   ;;  %s221_s17 = smov [#allocation7]  }
   0x3   :  { %s22_s16 = sshll.u32 %s220_s15, 4  ;;  %s36_s18 = sshll.u32 %s221_s17, 4  ;;  %s23_s16 = int_to_ptr.vmem [resolvable:$true] %s22_s16  ;;  %s37_s18 = int_to_ptr.vmem [resolvable:$true] %s36_s18 }
   0x4   :  { %s162_s19 = scalar_lea.vmem %s23_s16, 256  ;;  %p167_p1 = scmp.lt.s32.totalorder %s23_s16, %s23_s16 }
   0x5   :  { %p163_p0 = scmp.ne.s32.totalorder %s23_s16, %s162_s19  ;;  %p168_p2 = scmp.lt.s32.totalorder %s162_s19, %s162_s19 }
   0x7   :  { %p169_p3 = por %p168_p2, %p167_p1 }
   0x9   :  { %p170_p4 = pnand %p169_p3, %p163_p0 }
   0xb   :  { %173 = shalt.err (!%p170_p4)
}
   0xc   :  { %25 = dma.hbm_to_vmem [thread:$0]  %s263_s0, 256, %s23_s16, [#allocation5]  }
   0xd   :  { %s182_s22 = scalar_lea.vmem %s37_s18, 256  ;;  %p187_p6 = scmp.lt.s32.totalorder %s37_s18, %s37_s18 }
   0xe   :  { %p183_p5 = scmp.ne.s32.totalorder %s37_s18, %s182_s22  ;;  %p188_p7 = scmp.lt.s32.totalorder %s182_s22, %s182_s22 }
  0x10   :  { %p189_p8 = por %p188_p7, %p187_p6 }
  0x12   :  { %p190_p9 = pnand %p189_p8, %p183_p5 }
  0x14   :  { %193 = shalt.err (!%p190_p9)
}
  0x15   :  { %39 = dma.hbm_to_vmem [thread:$0]  %s264_s1, 256, %s37_s18, [#allocation8]  }
  0x16   :  { %214 = dma.done.wait [#allocation5], 256  }
  0x17   :  { %215 = vsyncadd [#allocation5], 4294967040 }
  0x18   :  { %216 = dma.done.wait [#allocation8], 256  }
  0x19   :  { %217 = vsyncadd [#allocation8], 4294967040  ;;  %v59_v0 = vld [vmem:[%s266_s3] sm:$0x3]  ;;  %v84_v3 = vld [vmem:[#allocation7] sm:$0xff]  ;;  %vm107_vm0 = vcmask 1043456  }
  0x1a   :  { %v82_v1 = vld [vmem:[#allocation4] sm:$0xff]  ;;  %v63_v2 = vmul.f32 1.442695, %v59_v0  ;;  %v83_v4 = vld [vmem:[#allocation4 + $0x8] sm:$0xff]  ;;  %v85_v5 = vld [vmem:[#allocation7 + $0x8] sm:$0xff]  ;;  %v60_v11 = vadd.f32 1.0, %v59_v0 }
  0x1b   :  { %v86_v6 = vsub.f32 %v82_v1, %v84_v3  ;;  %v87_v8 = vsub.f32 %v83_v4, %v85_v5  ;;  %v58_v9 = vld [vmem:[%s265_s2] sm:$0x3]  ;;  %vm66_vm1 = vcmask 254976   ;;  %s222_s28 = smov [#allocation9]  }
  0x1c   :  { %152 = vpow2.f32 %v63_v2  ;;  %v61_v12 = vmul.f32 %v58_v9, %v58_v9  ;;  %s135_s29 = sshll.u32 %s222_s28, 4  ;;  %s136_s29 = int_to_ptr.vmem [resolvable:$true] %s135_s29 }
  0x1d   :  { %v90_v7 = vmul.f32 %v86_v6, %v86_v6  ;;  %v91_v13 = vmul.f32 %v87_v8, %v87_v8  ;;  %s194_s6 = scalar_lea.vmem %s136_s29, 128  ;;  %p199_p11 = scmp.lt.s32.totalorder %s136_s29, %s136_s29 }
  0x1e   :  { %v62_v17 = vsub.f32 %v60_v11, %v61_v12  ;;  %p195_p10 = scmp.ne.s32.totalorder %s136_s29, %s194_s6  ;;  %p200_p12 = scmp.lt.s32.totalorder %s194_s6, %s194_s6 }
  0x1f   :  { %v103_v10 = vcombine.high %v90_v7, %v90_v7  ;;  %v108_v14 = vsel %vm107_vm0, %v90_v7, 0.0  ;;  %v104_v18 = vcombine.high %v91_v13, %v91_v13  ;;  %v111_v19 = vsel %vm107_vm0, %v91_v13, 0.0 }
  0x20   :  { %p201_p13 = por %p200_p12, %p199_p11 }
  0x21   :  { %v109_v15 = vsel %vm107_vm0, %v103_v10, 0.0  ;;  %v113_v23 = vsel %vm107_vm0, %v104_v18, 0.0 }
  0x22   :  { %v110_v16 = vadd.f32 %v109_v15, %v108_v14  ;;  %p202_p0 = pnand %p201_p13, %p195_p10 }
  0x24   :  { %v112_v21 = vadd.f32 %v111_v19, %v110_v16 }
  0x26   :  { %v114_v25 = vadd.f32 %v113_v23, %v112_v21 }
  0x29   :  { %v153_v20 = vpop.eup %152 }
  0x2a   :  { %v65_v22 = vsub.f32 %v62_v17, %v153_v20 }
  0x2c   :  { %v67_v24 = vsel %vm66_vm1, %v65_v22, 0.0 }
  0x2d   :  { %68 = vadd.xlane.f32.xlu0 %v67_v24 }
  0x31   :  { %115 = vadd.xlane.f32.xlu0 %v114_v25 }
  0xb6   :  { %v69_v26 = vpop.xlane.xlu0 %68 }
  0xb7   :  { %v70_v27 = vrot.slane %v69_v26, 4 }
  0xb9   :  { %v71_v28 = vadd.f32 %v70_v27, %v69_v26 }
  0xba   :  { %v116_v29 = vpop.xlane.xlu0 %115 }
  0xbb   :  { %v72_v30 = vrot.slane %v71_v28, 2  ;;  %v117_v31 = vrot.slane %v116_v29, 4 }
  0xbd   :  { %v118_v32 = vadd.f32 %v117_v31, %v116_v29  ;;  %v73_v33 = vadd.f32 %v72_v30, %v71_v28 }
  0xbf   :  { %v119_v34 = vrot.slane %v118_v32, 2  ;;  %v74_v35 = vrot.slane %v73_v33, 1 }
  0xc1   :  { %v120_v36 = vadd.f32 %v119_v34, %v118_v32  ;;  %v75_v37 = vadd.f32 %v74_v35, %v73_v33 }
  0xc3   :  { %145 = vpush %v75_v37  ;;  %v121_v38 = vrot.slane %v120_v36, 1 }
  0xc5   :  { %v122_v39 = vadd.f32 %v121_v38, %v120_v36 }
  0xc7   :  { %147 = vpush %v122_v39 }
  0xf4   :  { %s146_s1 = spop %145 }
  0xf5   :  { %s77_s2 = smul.f32 -0.5, %s146_s1 }
  0xf7   :  { %s125_s3 = smul.f32 1.5, %s77_s2 }
  0xf8   :  { %s148_s30 = spop %147 }
  0xf9   :  { %s126_s5 = sadd.f32 %s148_s30, %s125_s3 }
  0xfb   :  { %v127_v40 = vstv %s126_s5 }
  0xfc   :  { %128 = vst [vmem:[#allocation9] sm:$0xff] %v127_v40 }
  0xfd   :  { %205 = shalt.err (!%p202_p0)
}
  0xfe   :  { %138 = dma.vmem_to_hbm [thread:$0]  %s136_s29, 128, %s267_s4, [#allocation6]  }
  0xff   :  { %218 = dma.done.wait [#allocation6], 128  }
 0x100   :  { %219 = vsyncadd [#allocation6], 4294967168 }
 0x101   :  { %142 = vsyncpa [#allocation5], 1 }
 0x102   :  { %143 = vsyncpa [#allocation8], 1 }
 0x103   :  { %144 = vsyncpa [#allocation6], 1 }

</bundles_post_ra>
